<compile_context>
chip_gen: v6e
topology: v6e:2x2x1
jax: 0.10.0
libtpu: 0.0.40
codegen_flags: <defaults>
</compile_context>

<pallas_src>
import jax
import jax.numpy as jnp
from jax import lax
from jax.experimental import pallas as pl
from jax.experimental.pallas import tpu as pltpu


_LANES = 128
_SUBLANES = 8
# ~4 MiB of input bytes per operand per grid step.
_TARGET_BLOCK_BYTES = 4 * 1024 * 1024


def _round_up(a, b):
    return ((a + b - 1) // b) * b


def _make_kernel(rows_per_block, n_rows, needs_mask):
    vregs = rows_per_block // _SUBLANES

    def kernel(x_ref, xr_ref, out_ref, acc_ref):
        i = pl.program_id(0)
        nblk = pl.num_programs(0)

        @pl.when(i == 0)
        def _init():
            acc_ref[...] = jnp.zeros_like(acc_ref)

        # Cast on-chip so narrow dtypes stream from HBM at native width.
        d = xr_ref[...].astype(jnp.float32) - x_ref[...].astype(jnp.float32)
        sq = d * d

        def _accumulate(vals):
            # Leading-axis reduce of the block down to one (8, 128) vreg:
            # pure VPU adds, and only a tiny accumulator load/store per step.
            acc_ref[...] += jnp.sum(
                vals.reshape(vregs, _SUBLANES, _LANES), axis=0)

        if needs_mask:
            is_last = i == nblk - 1

            @pl.when(jnp.logical_not(is_last))
            def _interior():
                _accumulate(sq)

            @pl.when(is_last)
            def _edge():
                # Zero the rows of the final (partial) block that fall outside
                # the real array; edge-block contents past the end are
                # unspecified, and jnp.where is a true select so NaN/Inf
                # garbage cannot leak.
                row = lax.broadcasted_iota(jnp.int32, sq.shape, 0)
                valid_rows = n_rows - i * rows_per_block
                _accumulate(jnp.where(row < valid_rows, sq, 0.0))
        else:
            _accumulate(sq)

        @pl.when(i == nblk - 1)
        def _finalize():
            out_ref[...] = acc_ref[...]

    return kernel


def vae_loss(x, x_reconstruction):
    """Sum-of-squared-errors loss computed in a Pallas TPU kernel.

    Returns scalar float32 loss = sum((x_reconstruction - x)**2).
    """
    assert x.shape == x_reconstruction.shape, "shape mismatch"
    n = x.size
    if n == 0:  # degenerate empty input
        return jnp.float32(0.0)

    # Flatten (free under jit for contiguous arrays); keep original dtype.
    xf = jnp.ravel(x)
    rf = jnp.ravel(x_reconstruction)

    # Corner case only: pad to a lane multiple (<= 127 zeros; both operands
    # padded identically so the padding contributes exactly 0).
    rem = n % _LANES
    if rem:
        pad = _LANES - rem
        xf = jnp.pad(xf, (0, pad))
        rf = jnp.pad(rf, (0, pad))

    n_rows = xf.shape[0] // _LANES
    x2d = xf.reshape(n_rows, _LANES)
    r2d = rf.reshape(n_rows, _LANES)

    itemsize = max(jnp.dtype(x2d.dtype).itemsize,
                   jnp.dtype(r2d.dtype).itemsize)
    # Row count must be a multiple of the packed-sublane tile for the dtype
    # (8 rows for 4-byte, 16 for 2-byte, 32 for 1-byte elements).
    sub_mult = _SUBLANES * max(1, 4 // itemsize)
    target_rows = max(sub_mult, _TARGET_BLOCK_BYTES // (_LANES * itemsize))
    target_rows = _round_up(target_rows, sub_mult)
    rows_per_block = min(target_rows, _round_up(n_rows, sub_mult))

    n_blocks = pl.cdiv(n_rows, rows_per_block)
    needs_mask = (n_rows % rows_per_block) != 0

    kernel = _make_kernel(rows_per_block, n_rows, needs_mask)

    cost = pl.CostEstimate(
        flops=3 * n,
        transcendentals=0,
        bytes_accessed=2 * n * itemsize + _SUBLANES * _LANES * 4,
    )

    partial = pl.pallas_call(
        kernel,
        out_shape=jax.ShapeDtypeStruct((_SUBLANES, _LANES), jnp.float32),
        grid_spec=pltpu.PrefetchScalarGridSpec(
            num_scalar_prefetch=0,
            grid=(n_blocks,),
            in_specs=[
                pl.BlockSpec((rows_per_block, _LANES), lambda i: (i, 0)),
                pl.BlockSpec((rows_per_block, _LANES), lambda i: (i, 0)),
            ],
            out_specs=pl.BlockSpec((_SUBLANES, _LANES), lambda i: (0, 0)),
            scratch_shapes=[pltpu.VMEM((_SUBLANES, _LANES), jnp.float32)],
        ),
        compiler_params=pltpu.CompilerParams(
            dimension_semantics=("arbitrary",),
            # 2 operands x 2 pipeline buffers x ~4 MiB = ~16 MiB actual use;
            # 40 MiB gives headroom yet stays well below v7x's 64 MiB VMEM.
            vmem_limit_bytes=40 * 1024 * 1024,
        ),
        cost_estimate=cost,
    )(x2d, r2d)

    # Tiny one-time cross-lane reduce of the single (8, 128) partial.
    return jnp.sum(partial)


if __name__ == "__main__":
    key = jax.random.PRNGKey(0)
    loss_fn = jax.jit(vae_loss)

    # Primary small NCHW example consistent with a VAE reconstruction loss.
    k1, k2 = jax.random.split(key)
    x = jax.random.normal(k1, (2, 4, 16, 16), dtype=jnp.float32)
    x_reconstruction = jax.random.normal(k2, (2, 4, 16, 16), dtype=jnp.float32)

    loss = loss_fn(x, x_reconstruction)
    loss = jax.block_until_ready(loss)
    ref = jnp.sum((x_reconstruction - x) ** 2)
    assert jnp.allclose(loss, ref, rtol=1e-5, atol=1e-5), (loss, ref)

    # Extra checks: ragged lane tail, ragged row tail, multi-block grid with
    # and without a masked edge block, and a narrow (bf16) dtype.
    cases = [
        ((3, 5, 17, 19), jnp.float32),      # lane padding + masked edge
        ((6, 4, 128, 100), jnp.float32),    # single full block, no mask
        ((8, 4, 256, 256), jnp.float32),    # 2 blocks, no mask
        ((5, 4, 256, 256), jnp.float32),    # 2 blocks, masked edge block
        ((4, 3, 64, 60), jnp.bfloat16),     # narrow dtype, masked edge
    ]
    for shape, dt in cases:
        key, ka, kb = jax.random.split(key, 3)
        a = jax.random.normal(ka, shape, dtype=jnp.float32).astype(dt)
        b = jax.random.normal(kb, shape, dtype=jnp.float32).astype(dt)
        got = jax.block_until_ready(loss_fn(a, b))
        want = jnp.sum((b.astype(jnp.float32) - a.astype(jnp.float32)) ** 2)
        assert jnp.allclose(got, want, rtol=1e-4, atol=1e-2), (shape, dt, got, want)

    print("KERNEL_OK")
</pallas_src>

<mosaic_0001>
module attributes {stable_mosaic.version = 11 : i64} {
  func.func @kernel(%arg0: i32, %arg1: memref<16x128xf32, #tpu.memory_space<vmem>>, %arg2: memref<16x128xf32, #tpu.memory_space<vmem>>, %arg3: memref<8x128xf32, #tpu.memory_space<vmem>>, %arg4: memref<8x128xf32, #tpu.memory_space<vmem>>) attributes {dimension_semantics = [#tpu.dimension_semantics<arbitrary>], iteration_bounds = array<i64: 1>, scalar_prefetch = 0 : i64, scratch_operands = 1 : i64, tpu.core_type = #tpu.core_type<tc>, window_params = [{transform_indices = @transform_0, window_bounds = array<i64: 16, 128>}, {transform_indices = @transform_1, window_bounds = array<i64: 16, 128>}, {pipeline_mode = #tpu.pipeline_mode<synchronous>, transform_indices = @transform_2, window_bounds = array<i64: 8, 128>}]} {
    %c0_i32 = arith.constant 0 : i32
    %0 = arith.cmpi eq, %arg0, %c0_i32 : i32
    %1 = arith.extui %0 : i1 to i32
    %c0_i32_0 = arith.constant 0 : i32
    %2 = arith.cmpi ne, %1, %c0_i32_0 : i32
    scf.if %2 {
      %cst_10 = arith.constant 0.000000e+00 : f32
      %15 = vector.broadcast %cst_10 : f32 to vector<8x128xf32>
      %c0_11 = arith.constant 0 : index
      %c0_12 = arith.constant 0 : index
      %16 = vector.load %arg4[%c0_11, %c0_12] : memref<8x128xf32, #tpu.memory_space<vmem>>, vector<8x128xf32>
      tpu.vector_store %arg4[%c0_11, %c0_12], %15 {strides = array<i32>} : memref<8x128xf32, #tpu.memory_space<vmem>>, vector<8x128xf32>,
    } else {
    }
    %c0 = arith.constant 0 : index
    %c0_1 = arith.constant 0 : index
    %3 = vector.load %arg2[%c0, %c0_1] : memref<16x128xf32, #tpu.memory_space<vmem>>, vector<16x128xf32>
    %c0_2 = arith.constant 0 : index
    %c0_3 = arith.constant 0 : index
    %4 = vector.load %arg1[%c0_2, %c0_3] : memref<16x128xf32, #tpu.memory_space<vmem>>, vector<16x128xf32>
    %5 = arith.subf %3, %4 : vector<16x128xf32>
    %6 = arith.mulf %5, %5 : vector<16x128xf32>
    %c0_4 = arith.constant 0 : index
    %c0_5 = arith.constant 0 : index
    %7 = vector.load %arg4[%c0_4, %c0_5] : memref<8x128xf32, #tpu.memory_space<vmem>>, vector<8x128xf32>
    %8 = vector.shape_cast %6 : vector<16x128xf32> to vector<2x8x128xf32>
    %cst = arith.constant dense<0.000000e+00> : vector<8x128xf32>
    %9 = vector.multi_reduction <add>, %8, %cst [0] : vector<2x8x128xf32> to vector<8x128xf32>
    %10 = arith.addf %7, %9 : vector<8x128xf32>
    %c0_6 = arith.constant 0 : index
    %c0_7 = arith.constant 0 : index
    %11 = vector.load %arg4[%c0_6, %c0_7] : memref<8x128xf32, #tpu.memory_space<vmem>>, vector<8x128xf32>
    tpu.vector_store %arg4[%c0_6, %c0_7], %10 {strides = array<i32>} : memref<8x128xf32, #tpu.memory_space<vmem>>, vector<8x128xf32>,
    %c0_i32_8 = arith.constant 0 : i32
    %12 = arith.cmpi eq, %arg0, %c0_i32_8 : i32
    %13 = arith.extui %12 : i1 to i32
    %c0_i32_9 = arith.constant 0 : i32
    %14 = arith.cmpi ne, %13, %c0_i32_9 : i32
    scf.if %14 {
      %c0_10 = arith.constant 0 : index
      %c0_11 = arith.constant 0 : index
      %15 = vector.load %arg4[%c0_10, %c0_11] : memref<8x128xf32, #tpu.memory_space<vmem>>, vector<8x128xf32>
      %c0_12 = arith.constant 0 : index
      %c0_13 = arith.constant 0 : index
      %16 = vector.load %arg3[%c0_12, %c0_13] : memref<8x128xf32, #tpu.memory_space<vmem>>, vector<8x128xf32>
      tpu.vector_store %arg3[%c0_12, %c0_13], %15 {strides = array<i32>} : memref<8x128xf32, #tpu.memory_space<vmem>>, vector<8x128xf32>,
    } else {
    }
    return
  }
  func.func @transform_0(%arg0: i32) -> (i32, i32) {
    %c0_i32 = arith.constant 0 : i32
    %c0_i32_0 = arith.constant 0 : i32
    return %arg0, %c0_i32 : i32, i32
  }
  func.func @transform_1(%arg0: i32) -> (i32, i32) {
    %c0_i32 = arith.constant 0 : i32
    %c0_i32_0 = arith.constant 0 : i32
    return %arg0, %c0_i32 : i32, i32
  }
  func.func @transform_2(%arg0: i32) -> (i32, i32) {
    %c0_i32 = arith.constant 0 : i32
    %c0_i32_0 = arith.constant 0 : i32
    %c0_i32_1 = arith.constant 0 : i32
    return %c0_i32, %c0_i32_0 : i32, i32
  }
}

</mosaic_0001>

<bundles_post_ra>
// kernel: vae_loss.1
= control target key start
LH: loop header
LB: loop body
LE: loop exit
PB: predicated region body
PF: predicated region fallthrough
CT: control target
= control target key end

     0   :  { %s67_s0 = inlined_call_operand.vmem [shape: f32[16,128], index: 0, kind: input, shape index: {}]   ;;  %s68_s1 = inlined_call_operand.vmem [shape: f32[16,128], index: 1, kind: input, shape index: {}]   ;;  %s69_s2 = inlined_call_operand.vmem [shape: f32[8,128], index: 2, kind: output, shape index: {}]  }
   0x1   :  { %v16_v0 = vld [vmem:[%s68_s1] sm:$0xff]  ;;  %v17_v1 = vld [vmem:[%s68_s1 + $0x8] sm:$0xff] }
   0x2   :  { %v18_v2 = vld [vmem:[%s67_s0] sm:$0xff]  ;;  %v19_v3 = vld [vmem:[%s67_s0 + $0x8] sm:$0xff] }
   0x3   :  { %v20_v4 = vsub.f32 %v16_v0, %v18_v2  ;;  %v21_v5 = vsub.f32 %v17_v1, %v19_v3 }
   0x5   :  { %v22_v6 = vmul.f32 %v20_v4, %v20_v4  ;;  %v23_v7 = vmul.f32 %v21_v5, %v21_v5 }
   0x7   :  { %v25_v8 = vadd.f32 %v23_v7, %v22_v6 }
   0x9   :  { %32 = vst [vmem:[%s69_s2] sm:$0xff] %v25_v8 }

</bundles_post_ra>
